<compile_context>
chip_gen: v6e
topology: v6e:2x2x1
jax: 0.10.0
libtpu: 0.0.40
codegen_flags: <defaults>
</compile_context>

<pallas_src>
import functools

import jax
import jax.numpy as jnp
from jax.experimental import pallas as pl
from jax.experimental.pallas import tpu as pltpu

_VMEM_LIMIT_BYTES = 32 * 1024 * 1024    # >= scoped default on v5e/v6e/v7x, < v7x physical
_BLOCK_BUDGET_BYTES = 24 * 1024 * 1024  # headroom under the limit for stack / semaphores


def bert_pooler_kernel(x_ref, w_ref, b_ref, o_ref):
    """One (TB, TN) output tile: tanh(x @ w + b) with f32 accumulation."""
    # x_ref: (TB, H)  first-token activations
    # w_ref: (H, TN)  weight pre-transposed to (in, out): K=H on RHS sublanes (MXU-native)
    # b_ref: (1, TN)  bias, lane-major
    # o_ref: (TB, TN)
    y = jnp.dot(x_ref[...], w_ref[...], preferred_element_type=jnp.float32)  # MXU, f32 acc
    y = y + b_ref[...].astype(jnp.float32)                                   # VPU, f32
    o_ref[...] = jnp.tanh(y).astype(o_ref.dtype)                             # EUP tanh, cast at store


def _probe_kernel(x_ref, o_ref):
    o_ref[...] = x_ref[...] + 1.0


@functools.lru_cache(maxsize=None)
def _single_buffering_supported():
    """True iff this JAX/Mosaic build accepts pipeline_mode=pl.Buffered(1)."""
    if not hasattr(pl, "Buffered"):
        return False
    try:
        x = jnp.zeros((8, 128), jnp.float32)
        out = pl.pallas_call(
            _probe_kernel,
            out_shape=jax.ShapeDtypeStruct((8, 128), jnp.float32),
            grid_spec=pltpu.PrefetchScalarGridSpec(
                num_scalar_prefetch=0,
                grid=(2,),
                in_specs=[pl.BlockSpec((8, 128), lambda i: (0, 0),
                                       pipeline_mode=pl.Buffered(1))],
                out_specs=pl.BlockSpec((8, 128), lambda i: (0, 0)),
            ),
        )(x)
        jax.block_until_ready(out)
        return True
    except Exception:  # pragma: no cover - depends on installed jax version
        return False


def _pick_batch_tile(batch, per_row_bytes, fixed_bytes, budget):
    """Largest batch tile (ideally the whole batch) whose VMEM blocks fit `budget`.

    A single grid step is preferred: on the 1-TensorCore chips the batch grid is
    a serial loop (~0.35us/step) with nothing to overlap -- the weight is
    VMEM-resident and the activation DMA is tiny.  Tiles are sublane-aligned
    divisors of the batch so no padded tail tile is ever computed.
    """
    def fits(tb):
        return fixed_bytes + tb * per_row_bytes <= budget

    if batch % 8 != 0 or fits(batch):
        return batch  # single grid step; block == full dim is always legal
    tile = 8
    for cand in range(16, batch, 8):
        if batch % cand == 0 and fits(cand):
            tile = cand
    return tile


def bert_pooler(hidden_states, weight_t, bias, *, n_split=1):
    """BertPooler forward: tanh(hidden_states[:, 0] @ weight_t + bias).

    Args:
      hidden_states: (B, S, H) activations.
      weight_t: (H, N) dense weight, i.e. the PyTorch nn.Linear weight (N, H)
        transposed ONCE at model-load time (MXU-native layout, no per-call
        transpose).  bf16 recommended: the kernel is weight-DMA bound.
      bias: (N,) bias (same dtype guidance as the weight).
      n_split: number of tiles the output-N axis is split into on a
        CORE_PARALLEL grid axis.  Set to 2 on v7x (2 TensorCores / chip) so each
        core DMAs only half the weight; leave at 1 on v5e / v6e (1 TensorCore).

    Returns:
      (B, N) pooled output in hidden_states.dtype.
    """
    B, _, H = hidden_states.shape
    Hw, N = weight_t.shape
    if Hw != H:
        raise ValueError("weight_t must have shape (hidden_size, n_dim)")
    if n_split < 1 or N % n_split != 0:
        raise ValueError("n_split must divide n_dim")
    TN = N // n_split
    if n_split > 1 and TN % 128 != 0:
        raise ValueError("each N tile must be a multiple of 128 lanes")

    # Token-0 selection: only B*H activation elements ever leave HBM.  Under jit,
    # allow_input_fusion lets XLA fuse this slice into the custom call operand.
    x0 = hidden_states[:, 0, :]            # (B, H)
    b2 = bias.reshape(1, N)                # (1, N) lane-major bias

    x_size = jnp.dtype(x0.dtype).itemsize
    w_size = jnp.dtype(weight_t.dtype).itemsize
    o_dtype = hidden_states.dtype
    o_size = jnp.dtype(o_dtype).itemsize

    # Weight/bias blocks are constant across the grid only when N is not split;
    # only then request single buffering (saves a full HxN VMEM copy).
    resident_params = n_split == 1
    single_buffer = resident_params and _single_buffering_supported()

    # VMEM-driven batch tile: prefer one grid step over the batch.
    w_buffers = 1 if single_buffer else 2
    fixed_bytes = w_buffers * (H * TN + TN) * w_size          # weight + bias blocks
    per_row_bytes = 2 * (H * x_size + TN * o_size)            # x + out, double-buffered
    TB = _pick_batch_tile(B, per_row_bytes, fixed_bytes, _BLOCK_BUDGET_BYTES)
    nb = pl.cdiv(B, TB)

    if single_buffer:
        w_spec = pl.BlockSpec((H, TN), lambda i, j: (0, j), pipeline_mode=pl.Buffered(1))
        b_spec = pl.BlockSpec((1, TN), lambda i, j: (0, j), pipeline_mode=pl.Buffered(1))
    else:
        w_spec = pl.BlockSpec((H, TN), lambda i, j: (0, j))
        b_spec = pl.BlockSpec((1, TN), lambda i, j: (0, j))

    # Batch axis: parallel. N axis: CORE_PARALLEL when actually split (v7x), so
    # the two TensorCores each fetch only their half of the weight.
    if n_split > 1:
        dim_sems = ("parallel", pltpu.CORE_PARALLEL)
    else:
        dim_sems = ("parallel", "arbitrary")

    # Total bytes across cores: the weight is read once in aggregate (each core
    # reads N/n_split of it), which keeps XLA's overlap decisions sane.
    cost = pl.CostEstimate(
        flops=2 * B * H * N,
        transcendentals=B * N,
        bytes_accessed=(B * H * x_size + H * N * w_size
                        + N * w_size + B * N * o_size),
    )

    return pl.pallas_call(
        bert_pooler_kernel,
        out_shape=jax.ShapeDtypeStruct((B, N), o_dtype),
        grid_spec=pltpu.PrefetchScalarGridSpec(
            num_scalar_prefetch=0,
            grid=(nb, n_split),
            in_specs=[
                pl.BlockSpec((TB, H), lambda i, j: (i, 0)),   # first-token tile
                w_spec,                                       # (H, TN) weight tile
                b_spec,                                       # (1, TN) bias tile
            ],
            out_specs=pl.BlockSpec((TB, TN), lambda i, j: (i, j)),
        ),
        compiler_params=pltpu.CompilerParams(
            dimension_semantics=dim_sems,
            vmem_limit_bytes=_VMEM_LIMIT_BYTES,
            allow_input_fusion=[True, False, False],
        ),
        cost_estimate=cost,
    )(x0, weight_t, b2)


if __name__ == "__main__":
    # Small, hardware-friendly shapes: batch multiple of 8 (sublane), hidden /
    # n_dim multiples of 128 (lane) -> dense unmasked stores, well-fed MXU.
    B, S, H, N = 8, 8, 128, 128
    key = jax.random.PRNGKey(0)
    k_x, k_w, k_b = jax.random.split(key, 3)

    hidden_states = jax.random.normal(k_x, (B, S, H), dtype=jnp.float32)

    # Synthetic nn.Linear(hidden_size=H, n_dim=N) parameters in PyTorch (out, in) layout.
    weight = jax.random.normal(k_w, (N, H), dtype=jnp.float32) * 0.05
    bias = jax.random.normal(k_b, (N,), dtype=jnp.float32) * 0.05

    # One-time model-load conversion (amortized, not per call):
    #   * transpose to (H, N) so the kernel needs no trans_b contraction,
    #   * cast parameters to bf16 (weight-DMA-bound kernel; MXU is natively bf16,
    #     accumulation stays f32 in-kernel).
    weight_t = weight.T.astype(jnp.bfloat16)
    bias_p = bias.astype(jnp.bfloat16)

    out = bert_pooler(hidden_states, weight_t, bias_p)   # use n_split=2 on v7x
    out = jax.block_until_ready(out)

    # Reference (mirrors the PyTorch forward, using the same bf16 parameters).
    ref = jnp.tanh(hidden_states[:, 0] @ weight_t.astype(jnp.float32)
                   + bias_p.astype(jnp.float32))
    assert out.shape == (B, N)
    # bf16 parameters -> modestly loosened tolerance (tanh output is bounded).
    assert jnp.allclose(out, ref, atol=1e-2, rtol=1e-2), (
        float(jnp.max(jnp.abs(out - ref))))

    print("KERNEL_OK")
</pallas_src>

<mosaic_0001>
module attributes {stable_mosaic.version = 11 : i64} {
  func.func @_probe_kernel(%arg0: i32, %arg1: memref<8x128xf32, #tpu.memory_space<vmem>>, %arg2: memref<8x128xf32, #tpu.memory_space<vmem>>) attributes {dimension_semantics = [#tpu.dimension_semantics<arbitrary>], iteration_bounds = array<i64: 2>, scalar_prefetch = 0 : i64, scratch_operands = 0 : i64, tpu.core_type = #tpu.core_type<tc>, window_params = [{pipeline_mode = #tpu.pipeline_mode<synchronous>, transform_indices = @transform_0, window_bounds = array<i64: 8, 128>}, {pipeline_mode = #tpu.pipeline_mode<synchronous>, transform_indices = @transform_1, window_bounds = array<i64: 8, 128>}]} {
    %c0 = arith.constant 0 : index
    %c0_0 = arith.constant 0 : index
    %0 = vector.load %arg1[%c0, %c0_0] : memref<8x128xf32, #tpu.memory_space<vmem>>, vector<8x128xf32>
    %cst = arith.constant 1.000000e+00 : f32
    %1 = vector.broadcast %cst : f32 to vector<8x128xf32>
    %2 = arith.addf %0, %1 : vector<8x128xf32>
    %c0_1 = arith.constant 0 : index
    %c0_2 = arith.constant 0 : index
    %3 = vector.load %arg2[%c0_1, %c0_2] : memref<8x128xf32, #tpu.memory_space<vmem>>, vector<8x128xf32>
    tpu.vector_store %arg2[%c0_1, %c0_2], %2 {strides = array<i32>} : memref<8x128xf32, #tpu.memory_space<vmem>>, vector<8x128xf32>,
    return
  }
  func.func @transform_0(%arg0: i32) -> (i32, i32) {
    %c0_i32 = arith.constant 0 : i32
    %c0_i32_0 = arith.constant 0 : i32
    %c0_i32_1 = arith.constant 0 : i32
    return %c0_i32, %c0_i32_0 : i32, i32
  }
  func.func @transform_1(%arg0: i32) -> (i32, i32) {
    %c0_i32 = arith.constant 0 : i32
    %c0_i32_0 = arith.constant 0 : i32
    %c0_i32_1 = arith.constant 0 : i32
    return %c0_i32, %c0_i32_0 : i32, i32
  }
}

module attributes {stable_mosaic.version = 11 : i64} {
  func.func @bert_pooler_kernel(%arg0: i32, %arg1: i32, %arg2: memref<8x128xf32, #tpu.memory_space<vmem>>, %arg3: memref<128x128xbf16, #tpu.memory_space<vmem>>, %arg4: memref<1x128xbf16, #tpu.memory_space<vmem>>, %arg5: memref<8x128xf32, #tpu.memory_space<vmem>>) attributes {dimension_semantics = [#tpu.dimension_semantics<parallel>, #tpu.dimension_semantics<arbitrary>], iteration_bounds = array<i64: 1, 1>, scalar_prefetch = 0 : i64, scratch_operands = 0 : i64, tpu.core_type = #tpu.core_type<tc>, window_params = [{transform_indices = @transform_0, window_bounds = array<i64: 8, 128>}, {transform_indices = @transform_1, window_bounds = array<i64: 128, 128>}, {transform_indices = @transform_2, window_bounds = array<i64: 1, 128>}, {transform_indices = @transform_3, window_bounds = array<i64: 8, 128>}]} {
    %c0 = arith.constant 0 : index
    %c0_0 = arith.constant 0 : index
    %0 = vector.load %arg2[%c0, %c0_0] : memref<8x128xf32, #tpu.memory_space<vmem>>, vector<8x128xf32>
    %c0_1 = arith.constant 0 : index
    %c0_2 = arith.constant 0 : index
    %1 = vector.load %arg3[%c0_1, %c0_2] : memref<128x128xbf16, #tpu.memory_space<vmem>>, vector<128x128xbf16>
    %cst = arith.constant dense<0.000000e+00> : vector<8x128xf32>
    %2 = tpu.matmul %0, %1, %cst {dimension_numbers = #tpu.dot_dimension_numbers<[1], [0], [0], [1], [0, 0, 1, 1], [], []>} : vector<8x128xf32>, vector<128x128xbf16>, vector<8x128xf32> -> vector<8x128xf32>
    %c0_3 = arith.constant 0 : index
    %c0_4 = arith.constant 0 : index
    %3 = vector.load %arg4[%c0_3, %c0_4] : memref<1x128xbf16, #tpu.memory_space<vmem>>, vector<1x128xbf16>
    %4 = arith.extf %3 : vector<1x128xbf16> to vector<1x128xf32>
    %5 = vector.broadcast %4 : vector<1x128xf32> to vector<8x128xf32>
    %6 = arith.addf %2, %5 : vector<8x128xf32>
    %7 = math.tanh %6 : vector<8x128xf32>
    %c0_5 = arith.constant 0 : index
    %c0_6 = arith.constant 0 : index
    %8 = vector.load %arg5[%c0_5, %c0_6] : memref<8x128xf32, #tpu.memory_space<vmem>>, vector<8x128xf32>
    tpu.vector_store %arg5[%c0_5, %c0_6], %7 {strides = array<i32>} : memref<8x128xf32, #tpu.memory_space<vmem>>, vector<8x128xf32>,
    return
  }
  func.func @transform_0(%arg0: i32, %arg1: i32) -> (i32, i32) {
    %c0_i32 = arith.constant 0 : i32
    %c0_i32_0 = arith.constant 0 : i32
    return %arg0, %c0_i32 : i32, i32
  }
  func.func @transform_1(%arg0: i32, %arg1: i32) -> (i32, i32) {
    %c0_i32 = arith.constant 0 : i32
    %c0_i32_0 = arith.constant 0 : i32
    return %c0_i32, %arg1 : i32, i32
  }
  func.func @transform_2(%arg0: i32, %arg1: i32) -> (i32, i32) {
    %c0_i32 = arith.constant 0 : i32
    %c0_i32_0 = arith.constant 0 : i32
    return %c0_i32, %arg1 : i32, i32
  }
  func.func @transform_3(%arg0: i32, %arg1: i32) -> (i32, i32) {
    %c0_i32 = arith.constant 0 : i32
    return %arg0, %arg1 : i32, i32
  }
}

</mosaic_0001>

<bundles_post_ra>
// kernel: tpu_custom_call.1
= control target key start
LH: loop header
LB: loop body
LE: loop exit
PB: predicated region body
PF: predicated region fallthrough
CT: control target
= control target key end

     0   :  { %6 = vsyncpa [#allocation3], 0  ;;  %s305_s0 = inlined_call_operand.hbm [shape: f32[8,128], index: 0, kind: input, shape index: {}]   ;;  %s306_s1 = inlined_call_operand.hbm [shape: f32[8,128], index: 1, kind: output, shape index: {}]  }
   0x1   :  { %7 = vsyncpa [#allocation4], 0  ;;  %s258_s6 = smov 0  }
   0x2 LB: > { %s145_s7 = sadd.s32 4294967295, %s244_s6   ;;  %p146_p0 = scmp.ge.s32.totalorder %s244_s6, 1  ;;  %s244_s6 = sphi %s258_s6, %s13_s6  }
   0x3   : > { %p60_p1 = scmp.lt.s32.totalorder %s244_s6, 3  ;;  %p270_p3 = scmp.eq.s32.totalorder %s145_s7, 0 }
   0x4   : > { %s246_s10 = smov [#allocation2]  }
   0x5   : > { %p266_p2 = pnand %p146_p0, %p60_p1  ;;  %s73_s11 = sshll.u32 %s246_s10, 4  ;;  %s74_s11 = int_to_ptr.vmem [resolvable:$true] %s73_s11 }
   0x6   : > { %s191_s12 = scalar_lea.vmem %s74_s11, 128  ;;  %p199_p10 = scmp.lt.s32.totalorder %s74_s11, %s74_s11 }
   0x7   : > { %p162_p4 = pneg %p266_p2  ;;  %p192_p7 = scmp.ne.s32.totalorder %s74_s11, %s191_s12 }
   0x8   : > { %p200_p11 = scmp.lt.s32.totalorder %s191_s12, %s191_s12 }
   0x9   : > { %p163_p5 = pnand %p270_p3, %p162_p4 }
   0xa   : > { %p201_p12 = por %p200_p11, %p199_p10 }
   0xb   : > { %p182_p6 = pneg %p163_p5 }
   0xd   : > { %p194_p8 = pnand %p192_p7, %p182_p6 }
   0xf   : > { %p195_p9 = pneg %p194_p8 }
  0x11   : > { %p202_p13 = pnand %p201_p12, %p195_p9 }
  0x13   : > { %205 = shalt.err (!%p202_p13)
}
  0x14   : > { %165 = dma.hbm_to_vmem [thread:$0]  (!%p163_p5), %s305_s0, 128, %s74_s11, [#allocation3]  }
  0x15   : > { %86 = sbr.rel (%p266_p2) target bundleno = 42 (0x2a), region = 24 }
  0x1a   : > { %235 = dma.done.wait (%p270_p3), [#allocation3], 128  }
  0x1b   : > { %237 = vsyncadd (%p270_p3), [#allocation3], 4294967168  ;;  %s247_s15 = smov [#allocation5]   ;;  %v96_v0 = vld [vmem:[#allocation2] sm:$0xff]  ;;  %p287_p0 = scmp.eq.s32.totalorder %s145_s7, 1 }
  0x1c   : > { %s106_s16 = sshll.u32 %s247_s15, 4  ;;  %v97_v1 = vadd.f32 1.0, %v96_v0  ;;  %s107_s16 = int_to_ptr.vmem [resolvable:$true] %s106_s16 }
  0x1d   : > { %s206_s18 = scalar_lea.vmem %s107_s16, 128  ;;  %p213_p5 = scmp.lt.s32.totalorder %s107_s16, %s107_s16 }
  0x1e   : > { %98 = vst [vmem:[#allocation5] sm:$0xff] %v97_v1  ;;  %p207_p1 = scmp.ne.s32.totalorder %s107_s16, %s206_s18  ;;  %p214_p6 = scmp.lt.s32.totalorder %s206_s18, %s206_s18 }
  0x20   : > { %p208_p2 = pnand %p207_p1, %p287_p0  ;;  %p215_p7 = por %p214_p6, %p213_p5 }
  0x22   : > { %p209_p4 = pneg %p208_p2 }
  0x24   : > { %p216_p3 = pnand %p215_p7, %p209_p4 }
  0x26   : > { %219 = shalt.err (!%p216_p3)
}
  0x27   : > { %159 = dma.vmem_to_hbm [thread:$0]  (%p287_p0), %s107_s16, 128, %s306_s1, [#allocation4]  }
  0x28   : > { %239 = dma.done.wait (%p287_p0), [#allocation4], 128  }
  0x29   : > { %241 = vsyncadd (%p287_p0), [#allocation4], 4294967168 }
  0x2a PF: > { %s13_s6 = sadd.s32 1, %s244_s6  }
  0x2b   : > { %p10_p8 = scmp.ge.s32.totalorder %s13_s6, 4  }
  0x2d   :  { %12 = sbr.rel (!%p10_p8) target bundleno = 2 (0x2), region = 53 }
  0x32   :  { %119 = vsyncpa [#allocation3], 1 }
  0x33   :  { %121 = vsyncpa [#allocation3 + $0x1], 1 }
  0x34   :  { %122 = vsyncpa [#allocation4], 1 }
  0x35   :  { %124 = vsyncpa [#allocation4 + $0x1], 1 }

// kernel: tpu_custom_call.1
= control target key start
LH: loop header
LB: loop body
LE: loop exit
PB: predicated region body
PF: predicated region fallthrough
CT: control target
= control target key end

     0   :  { %8 = vsyncpa [#allocation3], 0  ;;  %s327_s0 = inlined_call_operand.hbm [shape: f32[8,128], index: 0, kind: input, shape index: {}]   ;;  %s328_s1 = inlined_call_operand.hbm [shape: bf16[128,128], index: 1, kind: input, shape index: {}]   ;;  %s329_s2 = inlined_call_operand.vmem [shape: bf16[1,128], index: 2, kind: input, shape index: {}]   ;;  %s330_s3 = inlined_call_operand.hbm [shape: f32[8,128], index: 3, kind: output, shape index: {}]  }
   0x1   :  { %9 = vsyncpa [#allocation6], 0 }
   0x2   :  { %10 = vsyncpa [#allocation4], 0  ;;  %s288_s12 = smov [#allocation2]   ;;  %s289_s14 = smov [#allocation5]  }
   0x3   :  { %s17_s13 = sshll.u32 %s288_s12, 4  ;;  %s26_s15 = sshll.u32 %s289_s14, 4  ;;  %s18_s13 = int_to_ptr.vmem [resolvable:$true] %s17_s13  ;;  %s27_s15 = int_to_ptr.vmem [resolvable:$true] %s26_s15 }
   0x4   :  { %s230_s16 = scalar_lea.vmem %s18_s13, 128  ;;  %p235_p1 = scmp.lt.s32.totalorder %s18_s13, %s18_s13 }
   0x5   :  { %p231_p0 = scmp.ne.s32.totalorder %s18_s13, %s230_s16  ;;  %p236_p2 = scmp.lt.s32.totalorder %s230_s16, %s230_s16 }
   0x7   :  { %p237_p3 = por %p236_p2, %p235_p1 }
   0x9   :  { %p238_p4 = pnand %p237_p3, %p231_p0 }
   0xb   :  { %241 = shalt.err (!%p238_p4)
}
   0xc   :  { %20 = dma.hbm_to_vmem [thread:$0]  %s327_s0, 128, %s18_s13, [#allocation3]  }
   0xd   :  { %s250_s19 = scalar_lea.vmem %s27_s15, 1024  ;;  %p255_p6 = scmp.lt.s32.totalorder %s27_s15, %s27_s15 }
   0xe   :  { %p251_p5 = scmp.ne.s32.totalorder %s27_s15, %s250_s19  ;;  %p256_p7 = scmp.lt.s32.totalorder %s250_s19, %s250_s19 }
  0x10   :  { %p257_p8 = por %p256_p7, %p255_p6 }
  0x12   :  { %p258_p9 = pnand %p257_p8, %p251_p5 }
  0x14   :  { %261 = shalt.err (!%p258_p9)
}
  0x15   :  { %s290_s20 = smov 64   ;;  %s291_s21 = smov 4  }
  0x16   :  { %32 = dma.hbm_to_vmem [thread:$0]  %s328_s1, 1024, %s27_s15, [#allocation6], %s290_s20, %s290_s20, %s291_s21  }
  0x17   :  { %282 = dma.done.wait [#allocation3], 128  }
  0x18   :  { %283 = vsyncadd [#allocation3], 4294967168 }
  0x19   :  { %284 = dma.done.wait [#allocation6], 1024  }
  0x1a   :  { %285 = vsyncadd [#allocation6], 4294966272  ;;  %v292_v0 = vmov 0.0   ;;  %vm293_vm0 = vmmov 0   ;;  %v212_v1 = vld [vmem:[#allocation5 + $0x38] sm:$0xff]   ;;  %v213_v2 = vld [vmem:[#allocation5 + $0x30] sm:$0xff]   ;;  %v61_v10 = vlaneseq }
  0x1b   :  { %186 = vmatprep.subr.bf16.mxu0 %v292_v0  ;;  %202 = vmatprep.mubr.msk.f32.mxu0 %vm293_vm0, %v292_v0  ;;  %v214_v3 = vld [vmem:[#allocation5 + $0x28] sm:$0xff]   ;;  %v215_v4 = vld [vmem:[#allocation5 + $0x20] sm:$0xff]   ;;  %v216_v5 = vld [vmem:[#allocation5 + $0x18] sm:$0xff]   ;;  %s294_s24 = smov [#allocation7]  }
  0x1c   :  { %187 = vmatpush3.bf16.msra.mxu0 %v212_v1  ;;  %v217_v6 = vld [vmem:[#allocation5 + $0x10] sm:$0xff]   ;;  %v218_v7 = vld [vmem:[#allocation5 + $0x8] sm:$0xff]   ;;  %v219_v8 = vld [vmem:[#allocation5] sm:$0xff]   ;;  %v62_v11 = vshrl.u32 %v61_v10, 7  ;;  %s159_s25 = sshll.u32 %s294_s24, 4  ;;  %s160_s25 = int_to_ptr.vmem [resolvable:$true] %s159_s25 }
  0x1d   :  { %188 = vmatprep.subr.bf16.mxu0 %v292_v0  ;;  %v42_v9 = vld [vmem:[#allocation2] sm:$0xff]  ;;  %s262_s26 = scalar_lea.vmem %s160_s25, 128  ;;  %p267_p11 = scmp.lt.s32.totalorder %s160_s25, %s160_s25 }
  0x1e   :  { %v59_v12 = vld [vmem:[%s329_s2] sm:$0x1]  ;;  %v63_v14 = vsub.s32 0, %v62_v11  ;;  %p263_p10 = scmp.ne.s32.totalorder %s160_s25, %s262_s26  ;;  %p268_p12 = scmp.lt.s32.totalorder %s262_s26, %s262_s26 }
  0x1f   :  { %v60_v13 = vunpack.c.l.bf16 %v59_v12 }
  0x20   :  { %189 = vmatpush3.bf16.msra.mxu0 %v213_v2  ;;  %p269_p13 = por %p268_p12, %p267_p11 }
  0x21   :  { %190 = vmatprep.subr.bf16.mxu0 %v292_v0  ;;  %v64_v15 = vrot.slane %v60_v13, %v63_v14 }
  0x22   :  { %p270_p0 = pnand %p269_p13, %p263_p10 }
  0x24   :  { %191 = vmatpush3.bf16.msra.mxu0 %v214_v3 }
  0x25   :  { %192 = vmatprep.subr.bf16.mxu0 %v292_v0 }
  0x28   :  { %193 = vmatpush3.bf16.msra.mxu0 %v215_v4 }
  0x29   :  { %194 = vmatprep.subr.bf16.mxu0 %v292_v0 }
  0x2c   :  { %195 = vmatpush3.bf16.msra.mxu0 %v216_v5 }
  0x2d   :  { %196 = vmatprep.subr.bf16.mxu0 %v292_v0 }
  0x30   :  { %197 = vmatpush3.bf16.msra.mxu0 %v217_v6 }
  0x31   :  { %198 = vmatprep.subr.bf16.mxu0 %v292_v0 }
  0x34   :  { %199 = vmatpush3.bf16.msra.mxu0 %v218_v7 }
  0x35   :  { %200 = vmatprep.subr.bf16.mxu0 %v292_v0 }
  0x38   :  { %201 = vmatpush3.bf16.msra.mxu0 %v219_v8 }
  0x3b   :  { %203 = vmatmul.mubr.f32.vlgmr.msra.gmra.mxu0 %v42_v9 }
  0xfb   :  { %v147_v16 = vpop.f32.mrf.mxu0 }
  0xfc   :  { %v148_v17 = vadd.f32 %v147_v16, %v64_v15 }
  0xfd   :  { %v204_v18 = vpop.f32.mrf.mxu0 }
  0xfe   :  { %220 = vtanh.f32 %v148_v17 }
 0x10b   :  { %v221_v19 = vpop.eup %220 }
 0x10c   :  { %152 = vst [vmem:[#allocation7] sm:$0xff] %v221_v19 }
 0x10d   :  { %273 = shalt.err (!%p270_p0)
}
 0x10e   :  { %162 = dma.vmem_to_hbm [thread:$0]  %s160_s25, 128, %s330_s3, [#allocation4]  }
 0x10f   :  { %286 = dma.done.wait [#allocation4], 128  }
 0x110   :  { %287 = vsyncadd [#allocation4], 4294967168 }
 0x111   :  { %166 = vsyncpa [#allocation3], 1 }
 0x112   :  { %167 = vsyncpa [#allocation6], 1 }
 0x113   :  { %168 = vsyncpa [#allocation4], 1 }

</bundles_post_ra>
